<compile_context>
chip_gen: v5e
topology: v5e:2x2
jax: 0.10.0
libtpu: 0.0.40
codegen_flags: <defaults>
</compile_context>

<pallas_src>
import functools

import jax
import jax.numpy as jnp
from jax.experimental import pallas as pl
from jax.experimental.pallas import tpu as pltpu

EPS = 1e-5  # torch.nn.LayerNorm default eps

# Set to jnp.bfloat16 on v6e / v7x for MXU-native matmuls (f32 accumulation is
# kept via preferred_element_type). Left at f32 to match the reference bit-for-bit.
MATMUL_DTYPE = jnp.float32


# ---------------------------------------------------------------------------
# Fused FFN kernel: out = relu(LN(x) @ W1 + b1) @ W2 + b2 + x
# x_ref: (TR, D) rows of the flattened (B*L, D) activation.
# dvec_ref: (3, D) packed [ln_gamma, ln_beta, b2].
# ---------------------------------------------------------------------------
def _ffn_kernel(x_ref, dvec_ref, w1_ref, b1_ref, w2_ref, o_ref, *, matmul_dtype):
    x = x_ref[...]                       # (TR, D) f32

    g = dvec_ref[0:1, :]                 # (1, D) LN gamma
    b = dvec_ref[1:2, :]                 # (1, D) LN beta
    b2 = dvec_ref[2:3, :]                # (1, D) second linear bias

    # LayerNorm in f32 (VPU path; v5e has no bf16 VPU).
    mu = jnp.mean(x, axis=-1, keepdims=True)
    var = jnp.mean(jnp.square(x - mu), axis=-1, keepdims=True)
    xn = (x - mu) * jax.lax.rsqrt(var + EPS) * g + b

    # Linear -> ReLU -> Linear on the MXU, f32 accumulation.
    h = jnp.dot(xn.astype(matmul_dtype), w1_ref[...].astype(matmul_dtype),
                preferred_element_type=jnp.float32) + b1_ref[...]
    h = jnp.maximum(h, 0.0)
    y = jnp.dot(h.astype(matmul_dtype), w2_ref[...].astype(matmul_dtype),
                preferred_element_type=jnp.float32) + b2

    # Dropout layers are identity in eval-mode forward; residual add, single store.
    o_ref[...] = (y + x).astype(o_ref.dtype)


def _row_tile(num_rows):
    """Pick a sublane-aligned row tile. Prefer >=2 grid points (v7x dual TC)."""
    if num_rows % 16 == 0:
        for tr in (256, 128, 64, 32, 16, 8):
            if num_rows % tr == 0 and num_rows // tr >= 2:
                return tr
    return num_rows  # single full-extent block


def ffn_pallas(x, params, *, matmul_dtype=MATMUL_DTYPE):
    """x: (..., D) float32. Returns FFN(x) with residual, same shape as x."""
    orig_shape = x.shape
    D = orig_shape[-1]
    x2 = x.reshape(-1, D)                       # fold batch/seq into rows
    R = x2.shape[0]
    F = params["w1"].shape[1]

    # Pack the three D-sized vectors into one slab (one DMA instead of three).
    dvec = jnp.stack(
        [params["ln_g"].reshape(D),
         params["ln_b"].reshape(D),
         params["b2"].reshape(D)], axis=0)      # (3, D)
    b1 = params["b1"].reshape(1, F)

    tr = _row_tile(R)
    grid = (R // tr,)

    kernel = functools.partial(_ffn_kernel, matmul_dtype=matmul_dtype)
    y2 = pl.pallas_call(
        kernel,
        out_shape=jax.ShapeDtypeStruct((R, D), x.dtype),
        grid=grid,
        in_specs=[
            pl.BlockSpec((tr, D), lambda i: (i, 0)),   # activation row tile
            pl.BlockSpec((3, D), lambda i: (0, 0)),    # packed LN params + b2
            pl.BlockSpec((D, F), lambda i: (0, 0)),    # W1 (fetched once)
            pl.BlockSpec((1, F), lambda i: (0, 0)),    # b1
            pl.BlockSpec((F, D), lambda i: (0, 0)),    # W2 (fetched once)
        ],
        out_specs=pl.BlockSpec((tr, D), lambda i: (i, 0)),
        compiler_params=pltpu.CompilerParams(dimension_semantics=("parallel",)),
    )(x2, dvec, params["w1"], b1, params["w2"])

    return y2.reshape(orig_shape)


# ---------------------------------------------------------------------------
# Pure-JAX reference (mirrors the PyTorch module in eval mode) and init.
# Linear weights are stored pre-transposed as (in, out) so we compute x @ W.
# ---------------------------------------------------------------------------
def ffn_reference(x, p):
    mu = jnp.mean(x, axis=-1, keepdims=True)
    var = jnp.mean(jnp.square(x - mu), axis=-1, keepdims=True)
    xn = (x - mu) * jax.lax.rsqrt(var + EPS) * p["ln_g"] + p["ln_b"]
    h = jnp.maximum(xn @ p["w1"] + p["b1"], 0.0)
    y = h @ p["w2"] + p["b2"]
    return y + x


def init_ffn_params(key, d_model, ffn_dim):
    k1, k2, k3, k4 = jax.random.split(key, 4)
    return dict(
        ln_g=jnp.ones((d_model,), jnp.float32),
        ln_b=jnp.zeros((d_model,), jnp.float32),
        w1=jax.random.normal(k1, (d_model, ffn_dim), jnp.float32) * 0.02,
        b1=jax.random.normal(k2, (ffn_dim,), jnp.float32) * 0.02,
        w2=jax.random.normal(k3, (ffn_dim, d_model), jnp.float32) * 0.02,
        b2=jax.random.normal(k4, (d_model,), jnp.float32) * 0.02,
    )


if __name__ == "__main__":
    # config: d_model=32, ffn_dim=64, dropout=0.1 (eval-mode -> identity)
    B, L, D_MODEL, FFN_DIM = 2, 8, 32, 64

    key = jax.random.PRNGKey(0)
    k_x, k_p = jax.random.split(key)
    params = init_ffn_params(k_p, D_MODEL, FFN_DIM)
    x = jax.random.normal(k_x, (B, L, D_MODEL), jnp.float32)

    out = jax.block_until_ready(ffn_pallas(x, params))
    ref = jax.block_until_ready(ffn_reference(x, params))

    assert out.shape == (B, L, D_MODEL)
    assert bool(jnp.all(jnp.isfinite(out)))
    assert bool(jnp.allclose(out, ref, atol=1e-2, rtol=1e-2)), (
        "max abs err = %e" % float(jnp.max(jnp.abs(out - ref))))
    print("KERNEL_OK")
</pallas_src>

<mosaic_0001>
module attributes {stable_mosaic.version = 11 : i64} {
  func.func @_ffn_kernel(%arg0: i32, %arg1: memref<8x32xf32, #tpu.memory_space<vmem>>, %arg2: memref<3x32xf32, #tpu.memory_space<vmem>>, %arg3: memref<32x64xf32, #tpu.memory_space<vmem>>, %arg4: memref<1x64xf32, #tpu.memory_space<vmem>>, %arg5: memref<64x32xf32, #tpu.memory_space<vmem>>, %arg6: memref<8x32xf32, #tpu.memory_space<vmem>>) attributes {dimension_semantics = [#tpu.dimension_semantics<parallel>], iteration_bounds = array<i64: 2>, scalar_prefetch = 0 : i64, scratch_operands = 0 : i64, tpu.core_type = #tpu.core_type<tc>, window_params = [{transform_indices = @transform_0, window_bounds = array<i64: 8, 32>}, {pipeline_mode = #tpu.pipeline_mode<synchronous>, transform_indices = @transform_1, window_bounds = array<i64: 3, 32>}, {pipeline_mode = #tpu.pipeline_mode<synchronous>, transform_indices = @transform_2, window_bounds = array<i64: 32, 64>}, {pipeline_mode = #tpu.pipeline_mode<synchronous>, transform_indices = @transform_3, window_bounds = array<i64: 1, 64>}, {pipeline_mode = #tpu.pipeline_mode<synchronous>, transform_indices = @transform_4, window_bounds = array<i64: 64, 32>}, {transform_indices = @transform_5, window_bounds = array<i64: 8, 32>}]} {
    %c0 = arith.constant 0 : index
    %c0_0 = arith.constant 0 : index
    %0 = vector.load %arg1[%c0, %c0_0] : memref<8x32xf32, #tpu.memory_space<vmem>>, vector<8x32xf32>
    %c0_1 = arith.constant 0 : index
    %c0_2 = arith.constant 0 : index
    %1 = vector.load %arg2[%c0_1, %c0_2] : memref<3x32xf32, #tpu.memory_space<vmem>>, vector<1x32xf32>
    %c1 = arith.constant 1 : index
    %c0_3 = arith.constant 0 : index
    %2 = vector.load %arg2[%c1, %c0_3] : memref<3x32xf32, #tpu.memory_space<vmem>>, vector<1x32xf32>
    %c2 = arith.constant 2 : index
    %c0_4 = arith.constant 0 : index
    %3 = vector.load %arg2[%c2, %c0_4] : memref<3x32xf32, #tpu.memory_space<vmem>>, vector<1x32xf32>
    %cst = arith.constant dense<0.000000e+00> : vector<8xf32>
    %4 = vector.multi_reduction <add>, %0, %cst [1] : vector<8x32xf32> to vector<8xf32>
    %5 = vector.shape_cast %4 : vector<8xf32> to vector<8x1xf32>
    %cst_5 = arith.constant 3.200000e+01 : f32
    %6 = vector.broadcast %cst_5 : f32 to vector<8x1xf32>
    %7 = arith.divf %5, %6 : vector<8x1xf32>
    %8 = vector.broadcast %7 : vector<8x1xf32> to vector<8x32xf32>
    %9 = arith.subf %0, %8 : vector<8x32xf32>
    %10 = arith.mulf %9, %9 : vector<8x32xf32>
    %cst_6 = arith.constant dense<0.000000e+00> : vector<8xf32>
    %11 = vector.multi_reduction <add>, %10, %cst_6 [1] : vector<8x32xf32> to vector<8xf32>
    %12 = vector.shape_cast %11 : vector<8xf32> to vector<8x1xf32>
    %cst_7 = arith.constant 3.200000e+01 : f32
    %13 = vector.broadcast %cst_7 : f32 to vector<8x1xf32>
    %14 = arith.divf %12, %13 : vector<8x1xf32>
    %15 = vector.broadcast %7 : vector<8x1xf32> to vector<8x32xf32>
    %16 = arith.subf %0, %15 : vector<8x32xf32>
    %cst_8 = arith.constant 9.99999974E-6 : f32
    %17 = vector.broadcast %cst_8 : f32 to vector<8x1xf32>
    %18 = arith.addf %14, %17 : vector<8x1xf32>
    %19 = math.rsqrt %18 : vector<8x1xf32>
    %20 = vector.broadcast %19 : vector<8x1xf32> to vector<8x32xf32>
    %21 = arith.mulf %16, %20 : vector<8x32xf32>
    %22 = vector.broadcast %1 : vector<1x32xf32> to vector<8x32xf32>
    %23 = arith.mulf %21, %22 : vector<8x32xf32>
    %24 = vector.broadcast %2 : vector<1x32xf32> to vector<8x32xf32>
    %25 = arith.addf %23, %24 : vector<8x32xf32>
    %c0_9 = arith.constant 0 : index
    %c0_10 = arith.constant 0 : index
    %26 = vector.load %arg3[%c0_9, %c0_10] : memref<32x64xf32, #tpu.memory_space<vmem>>, vector<32x64xf32>
    %cst_11 = arith.constant dense<0.000000e+00> : vector<8x64xf32>
    %27 = tpu.matmul %25, %26, %cst_11 {dimension_numbers = #tpu.dot_dimension_numbers<[1], [0], [0], [1], [0, 0, 1, 1], [], []>} : vector<8x32xf32>, vector<32x64xf32>, vector<8x64xf32> -> vector<8x64xf32>
    %c0_12 = arith.constant 0 : index
    %c0_13 = arith.constant 0 : index
    %28 = vector.load %arg4[%c0_12, %c0_13] : memref<1x64xf32, #tpu.memory_space<vmem>>, vector<1x64xf32>
    %29 = vector.broadcast %28 : vector<1x64xf32> to vector<8x64xf32>
    %30 = arith.addf %27, %29 : vector<8x64xf32>
    %cst_14 = arith.constant 0.000000e+00 : f32
    %31 = vector.broadcast %cst_14 : f32 to vector<8x64xf32>
    %32 = arith.maximumf %30, %31 : vector<8x64xf32>
    %c0_15 = arith.constant 0 : index
    %c0_16 = arith.constant 0 : index
    %33 = vector.load %arg5[%c0_15, %c0_16] : memref<64x32xf32, #tpu.memory_space<vmem>>, vector<64x32xf32>
    %cst_17 = arith.constant dense<0.000000e+00> : vector<8x32xf32>
    %34 = tpu.matmul %32, %33, %cst_17 {dimension_numbers = #tpu.dot_dimension_numbers<[1], [0], [0], [1], [0, 0, 1, 1], [], []>} : vector<8x64xf32>, vector<64x32xf32>, vector<8x32xf32> -> vector<8x32xf32>
    %35 = vector.broadcast %3 : vector<1x32xf32> to vector<8x32xf32>
    %36 = arith.addf %34, %35 : vector<8x32xf32>
    %37 = arith.addf %36, %0 : vector<8x32xf32>
    %c0_18 = arith.constant 0 : index
    %c0_19 = arith.constant 0 : index
    %38 = vector.load %arg6[%c0_18, %c0_19] : memref<8x32xf32, #tpu.memory_space<vmem>>, vector<8x32xf32>
    tpu.vector_store %arg6[%c0_18, %c0_19], %37 {strides = array<i32>} : memref<8x32xf32, #tpu.memory_space<vmem>>, vector<8x32xf32>,
    return
  }
  func.func @transform_0(%arg0: i32) -> (i32, i32) {
    %c0_i32 = arith.constant 0 : i32
    %c0_i32_0 = arith.constant 0 : i32
    return %arg0, %c0_i32 : i32, i32
  }
  func.func @transform_1(%arg0: i32) -> (i32, i32) {
    %c0_i32 = arith.constant 0 : i32
    %c0_i32_0 = arith.constant 0 : i32
    %c0_i32_1 = arith.constant 0 : i32
    return %c0_i32, %c0_i32_0 : i32, i32
  }
  func.func @transform_2(%arg0: i32) -> (i32, i32) {
    %c0_i32 = arith.constant 0 : i32
    %c0_i32_0 = arith.constant 0 : i32
    %c0_i32_1 = arith.constant 0 : i32
    return %c0_i32, %c0_i32_0 : i32, i32
  }
  func.func @transform_3(%arg0: i32) -> (i32, i32) {
    %c0_i32 = arith.constant 0 : i32
    %c0_i32_0 = arith.constant 0 : i32
    %c0_i32_1 = arith.constant 0 : i32
    return %c0_i32, %c0_i32_0 : i32, i32
  }
  func.func @transform_4(%arg0: i32) -> (i32, i32) {
    %c0_i32 = arith.constant 0 : i32
    %c0_i32_0 = arith.constant 0 : i32
    %c0_i32_1 = arith.constant 0 : i32
    return %c0_i32, %c0_i32_0 : i32, i32
  }
  func.func @transform_5(%arg0: i32) -> (i32, i32) {
    %c0_i32 = arith.constant 0 : i32
    %c0_i32_0 = arith.constant 0 : i32
    return %arg0, %c0_i32 : i32, i32
  }
}

</mosaic_0001>

<bundles_post_ra>
// kernel: tpu_custom_call.1
= control target key start
LH: loop header
LB: loop body
LE: loop exit
PB: predicated region body
PF: predicated region fallthrough
CT: control target
= control target key end

     0   :  { %10 = vsyncpa [#allocation3], 0  ;;  %s697_s0 = inlined_call_operand.vmem [shape: f32[16,32], index: 0, kind: input, shape index: {}]   ;;  %s698_s1 = inlined_call_operand.vmem [shape: f32[3,32], index: 1, kind: input, shape index: {}]   ;;  %s699_s2 = inlined_call_operand.vmem [shape: f32[32,64], index: 2, kind: input, shape index: {}]   ;;  %s700_s3 = inlined_call_operand.vmem [shape: f32[1,64], index: 3, kind: input, shape index: {}]   ;;  %s701_s4 = inlined_call_operand.vmem [shape: f32[64,32], index: 4, kind: input, shape index: {}]   ;;  %s702_s5 = inlined_call_operand.hbm [shape: f32[16,32], index: 5, kind: output, shape index: {}]  }
   0x1   :  { %12 = vsyncpa [#allocation3 + $0x1], 0  ;;  %s555_s18 = smov 0   ;;  %s557_s19 = smov 0  }
   0x2   :  { %s559_s20 = smov 0   ;;  %s561_s21 = smov 0  }
   0x3 LB: > { %s576_s22 = sadd.s32 4294967295, %s522_s21   ;;  %s400_s23 = sadd.s32 4294967294, %s522_s21   ;;  %s522_s21 = sphi %s561_s21, %s708_s21   ;;  %s518_s20 = sphi %s559_s20, %s707_s20   ;;  %s514_s19 = sphi %s557_s19, %s706_s19   ;;  %s510_s18 = sphi %s555_s18, %s705_s18  }
   0x4   : > { %s580_s24 = sadd.s32 1, %s522_s21   ;;  %s135_s25 = sadd.s32 1, %s518_s20 }
   0x5   : > { %s132_s26 = ssub.s32 %s522_s21, %s580_s24  ;;  %p145_p0 = scmp.ne.s32.totalorder %s518_s20, %s514_s19 }
   0x6   : > { %p133_p1 = scmp.eq.s32.totalorder %s132_s26, 0  ;;  %p146_p2 = scmp.eq.s32.totalorder %s576_s22, 1 }
   0x7   : > { %p151_p3 = scmp.ne.s32.totalorder %s514_s19, %s510_s18  ;;  %p152_p4 = scmp.eq.s32.totalorder %s400_s23, 1 }
   0x8   : > { %s591_s27 = scalar_select %p133_p1, %s518_s20, %s135_s25  }
   0x9   : > { %p593_p5 = por %p146_p2, %p145_p0  ;;  %p597_p6 = por %p152_p4, %p151_p3 }
   0xa   : > { %p403_p7 = scmp.ge.s32.totalorder %s522_s21, 1  ;;  %p189_p8 = scmp.lt.s32.totalorder %s522_s21, 3 }
   0xc   : > { %p190_p9 = pnand %p403_p7, %p189_p8 }
   0xd   : > { %p216_p10 = scmp.lt.s32.totalorder (!%p190_p9), %s576_s22, 1  ;;  %s213_s8 = sand.u32 (!%p190_p9), 1, %s514_s19  }
   0xe   : > { %193 = sbr.rel (%p190_p9) target bundleno = 555 (0x22b), region = 40  ;;  %s409_s10 = sshll.u32 (!%p190_p9), %s576_s22, 3 }
   0xf   : > { %s336_s15 = scalar_lea.hbm (!%p190_p9), %s702_s5, %s409_s10  ;;  %s480_s7 = scalar_lea.hbm (!%p190_p9), %s702_s5, 16 }
  0x10   : > { %s340_s23 = sshll.u32 (!%p190_p9), %s336_s15, 4  ;;  %s341_s23 = int_to_ptr.hbm [resolvable:$true] %s340_s23 }
  0x11   : > { %s474_s25 = sshra.s32 (!%p190_p9), %s341_s23, 4  ;;  %s475_s25 = int_to_ptr.hbm [resolvable:$true] %s474_s25 }
  0x12   : > { %s476_s26 = scalar_lea.hbm (!%p190_p9), %s475_s25, 8  ;;  %p481_p0 = scmp.lt.s32.totalorder (!%p190_p9), %s475_s25, %s702_s5 }
  0x13   : > { %s217_s30 = scalar_select %p216_p10, %s576_s22, 1  ;;  %vm224_vm0 = vcmask 261120   ;;  %v524_v2 = vmov 32.0   ;;  %v261_v14 = vld [vmem:[%s699_s2 + $0x18] sm:$0xff]  ;;  %v260_v15 = vld [vmem:[%s699_s2 + $0x10] sm:$0xff]  ;;  %v259_v16 = vld [vmem:[%s699_s2 + $0x8] sm:$0xff] }
  0x14   : > { %456 = vrcp.f32 %v524_v2  ;;  %281 = vmatpush.msra.mxu0 %v261_v14  ;;  %v258_v17 = vld [vmem:[%s699_s2] sm:$0xff]  ;;  %v297_v18 = vld [vmem:[%s701_s4 + $0x38] sm:$0xff]  ;;  %v296_v19 = vld [vmem:[%s701_s4 + $0x30] sm:$0xff]  ;;  %vm299_vm5 = vcmask 523264   ;;  %s326_s22 = scalar_lea.sflag [#allocation3], %s213_s8  ;;  %p477_p11 = scmp.ne.s32.totalorder %s475_s25, %s476_s26 }
  0x15   : > { %s405_s6 = sshll.u32 %s217_s30, 3  ;;  %311 = vmatpush.msra.mxu1 %v297_v18  ;;  %v295_v20 = vld [vmem:[%s701_s4 + $0x28] sm:$0xff]  ;;  %v294_v23 = vld [vmem:[%s701_s4 + $0x20] sm:$0xff]  ;;  %v293_v25 = vld [vmem:[%s701_s4 + $0x18] sm:$0xff]  ;;  %p482_p1 = scmp.lt.s32.totalorder %s480_s7, %s476_s26 }
  0x16   : > { %s219_s9 = scalar_lea.vmem %s697_s0, %s405_s6  ;;  %282 = vmatpush.msra.mxu0 %v260_v15  ;;  %v452_v32 = vld [vmem:[%s698_s1] ss:$0 sm:$0xff]  ;;  %v453_v35 = vld [vmem:[%s698_s1 + $0x1] ss:$0 sm:$0xff]  ;;  %v292_v38 = vld [vmem:[%s701_s4 + $0x10] sm:$0xff]  ;;  %p478_p12 = pnand %p477_p11, %p593_p5 }
  0x17   : > { %v608_v0 = vld [vmem:[%s219_s9] sm:$0xff]  ;;  %312 = vmatpush.msra.mxu1 %v296_v19  ;;  %v291_v39 = vld [vmem:[%s701_s4 + $0x8] sm:$0xff]  ;;  %s404_s9 = sshll.u32 %s213_s8, 3  ;;  %p483_p2 = por %p482_p1, %p481_p0 }
  0x18   : > { %v225_v1 = vsel %vm224_vm0, %v608_v0, 0.0  ;;  %283 = vmatpush.msra.mxu0 %v259_v16  ;;  %v290_v40 = vld [vmem:[%s701_s4] sm:$0xff]  ;;  %s215_s16 = scalar_lea.vmem [#allocation2], %s404_s9  ;;  %p479_p13 = pneg %p478_p12 }
  0x19   : > { %226 = vadd.xlane.f32.xlu0 %v225_v1  ;;  %313 = vmatpush.msra.mxu1 %v295_v20  ;;  %v454_v41 = vld [vmem:[%s700_s3] ss:$0 sm:$0xff]  ;;  %v455_v45 = vld [vmem:[%s698_s1 + $0x2] ss:$0 sm:$0xff]  ;;  %s338_s17 = sshll.u32 %s215_s16, 4  ;;  %s339_s17 = int_to_ptr.vmem [resolvable:$true] %s338_s17 }
  0x1a   : > { %v457_v3 = vpop.eup %456  ;;  %284 = vmatpush.msra.mxu0 %v258_v17  ;;  %p484_p3 = pnand %p483_p2, %p479_p13 }
  0x1b   : > { %v229_v4 = vmul.f32 32.0, %v457_v3  ;;  %vm233_vm1 = vweird.f32 %v457_v3  ;;  %314 = vmatpush.msra.mxu1 %v294_v23 }
  0x1d   : > { %v230_v5 = vsub.f32 1.0, %v229_v4  ;;  %315 = vmatpush.msra.mxu1 %v293_v25 }
  0x1f   : > { %v231_v6 = vmul.f32 %v457_v3, %v230_v5  ;;  %316 = vmatpush.msra.mxu1 %v292_v38 }
  0x21   : > { %v232_v7 = vadd.f32 %v457_v3, %v231_v6  ;;  %317 = vmatpush.msra.mxu1 %v291_v39 }
  0x23   : > { %v234_v8 = vsel %vm233_vm1, %v457_v3, %v232_v7  ;;  %318 = vmatpush.msra.mxu1 %v290_v40 }
  0x8c   : > { %v227_v9 = vpop.xlane.xlu0 %226 }
  0x8d   : > { %v235_v10 = vmul.f32 %v234_v8, %v227_v9 }
  0x8f   : > { %v236_v11 = vsub.f32 %v608_v0, %v235_v10 }
  0x91   : > { %v237_v12 = vmul.f32 %v236_v11, %v236_v11 }
  0x93   : > { %v238_v13 = vsel %vm224_vm0, %v237_v12, 0.0 }
  0x94   : > { %239 = vadd.xlane.f32.xlu0 %v238_v13 }
 0x107   : > { %v240_v21 = vpop.xlane.xlu0 %239 }
 0x108   : > { %v241_v22 = vmul.f32 %v240_v21, %v234_v8 }
 0x10a   : > { %v242_v24 = vadd.f32 1e-05, %v241_v22 }
 0x10c   : > { %458 = vrsqrt.f32 %v242_v24  ;;  %vm249_vm3 = vweird.f32 %v242_v24 }
 0x112   : > { %v459_v26 = vpop.eup %458 }
 0x113   : > { %v244_v27 = vmul.f32 %v459_v26, %v242_v24  ;;  %vm250_vm2 = vweird.f32 %v459_v26 }
 0x114   : > { %vm251_vm4 = vmor %vm249_vm3, %vm250_vm2 }
 0x115   : > { %v245_v28 = vmul.f32 %v459_v26, %v244_v27 }
 0x117   : > { %v246_v29 = vmul.f32 0.5, %v245_v28 }
 0x119   : > { %v247_v30 = vsub.f32 1.5, %v246_v29 }
 0x11b   : > { %v248_v31 = vmul.f32 %v459_v26, %v247_v30 }
 0x11d   : > { %v252_v33 = vsel %vm251_vm4, %v459_v26, %v248_v31 }
 0x11e   : > { %v253_v34 = vmul.f32 %v252_v33, %v236_v11 }
 0x120   : > { %v255_v36 = vmul.f32 %v452_v32, %v253_v34 }
 0x122   : > { %v257_v37 = vadd.f32 %v453_v35, %v255_v36 }
 0x124   : > { %406 = vmatmul.msk.f32.vlgmr.msra.gmra.mxu0 %vm224_vm0, %v257_v37 }
 0x1a1   : > { %v286_v42 = vpop.f32.mrf.mxu0 }
 0x1a2   : > { %v287_v43 = vadd.f32 %v454_v41, %v286_v42 }
 0x1a4   : > { %v289_v44 = vmax.f32 %v287_v43, 0.0 }
 0x1a6   : > { %407 = vmatmul.msk.f32.vlgmr.msra.gmra.mxu1 %vm299_vm5, %v289_v44 }
 0x223   : > { %v320_v46 = vpop.f32.mrf.mxu1 }
 0x224   : > { %v321_v47 = vadd.f32 %v455_v45, %v320_v46 }
 0x226   : > { %v323_v48 = vadd.f32 %v321_v47, %v608_v0 }
 0x228   : > { %324 = vst.msk [vmem:[%s215_s16] sm:$0xff] %vm224_vm0, %v323_v48 }
 0x229   : > { %487 = shalt.err (!%p484_p3)
}
 0x22a   : > { %412 = dma.vmem_to_hbm [thread:$0]  (%p593_p5), %s339_s17, 128, %s341_s23, %s326_s22  }
 0x22b PF: > { %p418_p4 = scmp.ge.s32.totalorder %s522_s21, 2  ;;  %s352_s8 = sand.u32 1, %s510_s18  }
 0x22c   : > { %s353_s11 = scalar_lea.sflag [#allocation3], %s352_s8 }
 0x22d   : > { %p415_p7 = pnand %p418_p4, %p597_p6 }
 0x22f   : > { %p416_p8 = pneg %p415_p7 }
 0x231   : > { %505 = dma.done.wait (%p416_p8), %s353_s11, 128  }
 0x232   : > { %507 = vsyncadd (%p416_p8), %s353_s11, 4294967168  ;;  %p15_p9 = scmp.ge.s32.totalorder %s580_s24, 4   ;;  %s705_s18 = smov %s514_s19 }
 0x233   : > { %s706_s19 = smov %s518_s20  ;;  %s707_s20 = smov %s591_s27 }
 0x234   : > { %s708_s21 = smov %s580_s24  ;;  %17 = sbr.rel (!%p15_p9) target bundleno = 3 (0x3), region = 75 }
 0x239   :  { %359 = vsyncpa [#allocation3], 1 }
 0x23a   :  { %361 = vsyncpa [#allocation3 + $0x1], 1 }

</bundles_post_ra>
